<compile_context>
chip_gen: v5e
topology: v5e:2x2
jax: 0.10.0
libtpu: 0.0.40
codegen_flags: <defaults>
</compile_context>

<pallas_src>
import math
from collections import namedtuple
from functools import partial
from typing import List, Optional

import numpy as np
import jax
import jax.numpy as jnp
from jax import lax
from jax.experimental import pallas as pl
from jax.experimental.pallas import tpu as pltpu

ImageList = namedtuple("ImageList", ["tensors", "image_sizes"])


def _round_up(x: int, m: int) -> int:
    return ((x + m - 1) // m) * m


def _cdiv(a: int, b: int) -> int:
    return -(-a // b)


# ----------------------------------------------------------------------------
# Host helper: PyTorch bilinear (align_corners=False) interpolation matrix
# ----------------------------------------------------------------------------
def _interp_weights(in_size: int, out_size: int) -> np.ndarray:
    dst = np.arange(out_size, dtype=np.float64)
    scale = float(in_size) / float(out_size)
    src = np.maximum((dst + 0.5) * scale - 0.5, 0.0)
    i0 = np.minimum(np.floor(src).astype(np.int64), in_size - 1)
    i1 = np.minimum(i0 + 1, in_size - 1)
    w1 = (src - i0).astype(np.float32)
    w0 = (1.0 - w1).astype(np.float32)
    m = np.zeros((out_size, in_size), dtype=np.float32)
    rows = np.arange(out_size)
    np.add.at(m, (rows, i0), w0)
    np.add.at(m, (rows, i1), w1)
    return m


# ----------------------------------------------------------------------------
# Pallas kernel factory: fused (bilinear resize as two bf16 MXU matmuls)
#                        + normalize + zero-pad, one output row-band per step
# ----------------------------------------------------------------------------
def _make_fused_kernel(c: int, tile_h: int, h_out: int, need_row_mask: bool,
                       out_dtype):
    def kernel(img_ref, wh_ref, wwt_ref, scale_ref, biasw_ref, out_ref):
        # img_ref:   (C, H_in, W_in)     f32 or bf16 (resident)
        # wh_ref:    (TILE_H, H_in)      bf16        (pipelined row band of Wh)
        # wwt_ref:   (W_in, W_ker)       bf16        (resident, pre-transposed)
        # scale_ref: (C, 1, 1)           f32         (1/std)
        # biasw_ref: (C, 1, W_ker)       f32         (-mean/std, zero past w_out)
        # out_ref:   (C, TILE_H, W_ker)  out_dtype
        wh = wh_ref[...]
        wwt = wwt_ref[...]
        if need_row_mask:
            row = tile_h * pl.program_id(0) + lax.broadcasted_iota(
                jnp.int32, (tile_h, 1), 0)
            rowmask = (row < h_out).astype(jnp.float32)

        def body(ch, carry):
            # height pass on the MXU: (TILE_H, H_in) @ (H_in, W_in) -> f32
            t = jnp.dot(wh, img_ref[ch].astype(jnp.bfloat16),
                        preferred_element_type=jnp.float32)
            # width pass on the MXU:  (TILE_H, W_in) @ (W_in, W_ker) -> f32
            r = jnp.dot(t.astype(jnp.bfloat16), wwt,
                        preferred_element_type=jnp.float32)
            bias = biasw_ref[ch]
            if need_row_mask:
                bias = bias * rowmask      # keeps the zero-padded rows exactly 0
            out_ref[ch] = (r * scale_ref[ch] + bias).astype(out_dtype)
            return carry

        # fori_loop(unroll=True) keeps LLO visibility while bounding the live
        # ranges of the large per-channel f32 intermediates.
        lax.fori_loop(0, c, body, 0, unroll=True)

    return kernel


# ----------------------------------------------------------------------------
# Batch assembly: crop + stack fused under jit (single pass over the data)
# ----------------------------------------------------------------------------
@partial(jax.jit, static_argnums=(1, 2))
def _assemble_batch(slabs, h_pad: int, w_pad: int):
    return jnp.stack([s[:, :h_pad, :w_pad] for s in slabs], axis=0)


class GeneralizedRCNNTransform:
    def __init__(self, min_size, max_size, image_mean, image_std,
                 tile_rows=None, out_dtype=jnp.float32):
        if not isinstance(min_size, (list, tuple)):
            min_size = (min_size,)
        self.min_size = min_size
        self.max_size = max_size
        self.image_mean = image_mean
        self.image_std = image_std
        self.tile_rows = tile_rows              # cap on the row band (optional)
        self.out_dtype = jnp.dtype(out_dtype)   # bf16 halves writeback on v5e/v6e
        self.training = False                   # eval mode: size = min_size[-1]

        # ---- generation-aware VMEM budget ----
        try:
            self._vmem_cap = int(pltpu.get_tpu_info().vmem_capacity_bytes)
        except Exception:
            self._vmem_cap = 64 << 20           # conservative (v7x per-TC size)
        if self._vmem_cap >= (96 << 20):        # v5e / v6e: 128 MiB physical
            self._budget = 96 << 20
            self._limit_cap = 100 << 20
            self._img_input_dtype = jnp.float32   # cast to bf16 inside the kernel
        else:                                   # v7x: 64 MiB per TensorCore
            self._budget = (self._vmem_cap * 5) // 8      # ~40 MiB
            self._limit_cap = (self._vmem_cap * 3) // 4   # ~48 MiB
            self._img_input_dtype = jnp.bfloat16  # keep the resident image small

        self._plan_cache = {}
        self._resident_single_buffer = None     # pl.Buffered(1) support: unknown

    # ---- shape math identical to resize_image + recompute_scale_factor ----
    def _resized_hw(self, h, w):
        size = float(self.min_size[-1])
        min_s = float(min(h, w))
        max_s = float(max(h, w))
        scale = size / min_s
        if max_s * scale > self.max_size:
            scale = self.max_size / max_s
        return int(math.floor(h * scale)), int(math.floor(w * scale))

    # ---- VMEM accounting ----
    @staticmethod
    def _vmem_estimate(c, h_in, w_in, w_ker, tile_h, img_bytes, out_bytes,
                       res_bufs):
        resident = res_bufs * (c * h_in * w_in * img_bytes
                               + w_in * w_ker * 2
                               + c * w_ker * 4 + 4096)
        pipelined = 2 * (tile_h * h_in * 2 + c * tile_h * w_ker * out_bytes)
        transient = tile_h * w_in * 6 + tile_h * w_ker * 8
        if img_bytes == 4:
            transient += h_in * w_in * 2        # in-kernel bf16 cast of one channel
        return resident + pipelined + transient

    def _pick_tile_cap(self, c, h_in, w_in, w_ker, img_bytes, out_bytes,
                       res_bufs):
        resident = res_bufs * (c * h_in * w_in * img_bytes
                               + w_in * w_ker * 2
                               + c * w_ker * 4 + 4096)
        fixed_tr = h_in * w_in * 2 if img_bytes == 4 else 0
        per_row = 2 * (h_in * 2 + c * w_ker * out_bytes) + w_in * 6 + w_ker * 8
        avail = self._budget - resident - fixed_tr
        t = max(16, min(1024, (avail // per_row) if avail > 0 else 16))
        t = (t // 16) * 16
        if self.tile_rows is not None:
            # user value is a cap, never a blow-the-budget override
            t = min(t, max(16, (int(self.tile_rows) // 16) * 16))
        return int(t)

    # ---- build (and cache) the per-shape pallas_call + device constants ----
    def _build_plan(self, c, h_in, w_in, h_pad, w_pad, single_buffer):
        h_out, w_out = self._resized_hw(h_in, w_in)
        w_ker = _round_up(w_pad, 128)           # lane-dense, unmasked output stores
        img_bytes = 4 if self._img_input_dtype == jnp.float32 else 2
        out_bytes = self.out_dtype.itemsize
        res_bufs = 1 if single_buffer else 2

        # n_bands-first tiling: no tile-sized zero-row overhang.
        tile_cap = self._pick_tile_cap(c, h_in, w_in, w_ker, img_bytes,
                                       out_bytes, res_bufs)
        h_align = _round_up(h_pad, 16)
        tile_cap = min(tile_cap, h_align)
        n_bands = _cdiv(h_align, tile_cap)
        if n_bands == 1 and h_align >= 32:
            n_bands = 2                         # guarantee a 2-way v7x TC split
        if n_bands > 1 and (n_bands % 2):
            n_bands += 1                        # even split across 2 TensorCores
        tile_h = _round_up(_cdiv(h_pad, n_bands), 16)
        h_ker = n_bands * tile_h

        est = self._vmem_estimate(c, h_in, w_in, w_ker, tile_h, img_bytes,
                                  out_bytes, res_bufs)
        vmem_limit = min(self._limit_cap, max(32 << 20, est + (4 << 20)))
        if vmem_limit < est + (1 << 20):        # never set the limit below usage
            vmem_limit = min(self._vmem_cap, est + (4 << 20))

        # pad-aware interpolation matrices + normalization constants
        wh = np.zeros((h_ker, h_in), dtype=np.float32)
        wh[:h_out, :] = _interp_weights(h_in, h_out)
        wwt = np.zeros((w_in, w_ker), dtype=np.float32)
        wwt[:, :w_out] = _interp_weights(w_in, w_out).T
        std = np.asarray(self.image_std, dtype=np.float32)
        mean = np.asarray(self.image_mean, dtype=np.float32)
        scale = (1.0 / std).reshape(c, 1, 1)
        wmask = np.zeros((w_ker,), dtype=np.float32)
        wmask[:w_out] = 1.0
        biasw = (-mean / std).reshape(c, 1, 1) * wmask.reshape(1, 1, w_ker)

        consts = (jnp.asarray(wh, dtype=jnp.bfloat16),
                  jnp.asarray(wwt, dtype=jnp.bfloat16),
                  jnp.asarray(scale),
                  jnp.asarray(biasw))

        need_row_mask = h_out < h_ker
        kernel = _make_fused_kernel(c, tile_h, h_out, need_row_mask,
                                    self.out_dtype)

        def spec(shape, idx, resident):
            if resident and single_buffer:
                # resident blocks (constant index map) don't need double-buffering
                return pl.BlockSpec(shape, idx, pipeline_mode=pl.Buffered(1))
            return pl.BlockSpec(shape, idx)

        call = pl.pallas_call(
            kernel,
            out_shape=jax.ShapeDtypeStruct((c, h_ker, w_ker), self.out_dtype),
            grid=(n_bands,),
            in_specs=[
                spec((c, h_in, w_in), lambda i: (0, 0, 0), True),    # image
                pl.BlockSpec((tile_h, h_in), lambda i: (i, 0)),      # Wh band
                spec((w_in, w_ker), lambda i: (0, 0), True),         # WwT
                spec((c, 1, 1), lambda i: (0, 0, 0), True),          # 1/std
                spec((c, 1, w_ker), lambda i: (0, 0, 0), True),      # -mean/std
            ],
            out_specs=pl.BlockSpec((c, tile_h, w_ker), lambda i: (0, i, 0)),
            compiler_params=pltpu.CompilerParams(
                dimension_semantics=("parallel",),   # bands -> 2 TCs on v7x
                vmem_limit_bytes=int(vmem_limit)),
        )
        return call, consts, (h_out, w_out)

    # ---- fused normalize + resize + pad: one pipelined pallas_call per image ----
    def _normalize_resize_pad(self, image, h_pad, w_pad):
        c, h_in, w_in = image.shape
        img = image.astype(self._img_input_dtype)

        attempts = []
        if self._resident_single_buffer in (None, True):
            attempts.append(True)
        if self._resident_single_buffer in (None, False):
            attempts.append(False)

        last_err = None
        for sb in attempts:
            key = (c, h_in, w_in, h_pad, w_pad, sb)
            try:
                if key not in self._plan_cache:
                    self._plan_cache[key] = self._build_plan(
                        c, h_in, w_in, h_pad, w_pad, sb)
                call, consts, hw = self._plan_cache[key]
                out = call(img, *consts)
                self._resident_single_buffer = sb
                return out, hw
            except Exception as e:
                # e.g. pl.Buffered(1) unsupported by this JAX build -> fall back
                # to plain double-buffered specs (and remember the decision).
                last_err = e
                self._plan_cache.pop(key, None)
                if sb is False:
                    raise
        raise last_err

    @staticmethod
    def _resize_boxes(boxes, original_size, new_size):
        # (N,4) * (4,) broadcast is far too small to justify a kernel launch.
        (oh, ow), (nh, nw) = original_size, new_size
        ratios = jnp.asarray([nw / ow, nh / oh, nw / ow, nh / oh],
                             dtype=jnp.float32)
        return boxes.astype(jnp.float32) * ratios

    def __call__(self, images: List[jax.Array],
                 targets: Optional[List[dict]] = None,
                 size_divisible: int = 42):
        orig_sizes = [img.shape[-2:] for img in images]
        new_sizes = [self._resized_hw(h, w) for (h, w) in orig_sizes]
        max_h = max(h for h, _ in new_sizes)
        max_w = max(w for _, w in new_sizes)
        stride = float(size_divisible)
        h_pad = int(math.ceil(max_h / stride) * stride)
        w_pad = int(math.ceil(max_w / stride) * stride)

        slabs, image_sizes = [], []
        for i, img in enumerate(images):
            out, hw = self._normalize_resize_pad(img, h_pad, w_pad)
            slabs.append(out)
            image_sizes.append(hw)
            if targets is not None and targets[i] is not None:
                targets[i]["boxes"] = self._resize_boxes(
                    targets[i]["boxes"], orig_sizes[i], hw)

        # crop the kernel's lane/tile over-pad back to (h_pad, w_pad) and batch
        # in a single fused pass.
        batched = _assemble_batch(tuple(slabs), h_pad, w_pad)
        return ImageList(batched, image_sizes), targets


# ----------------------------------------------------------------------------
# Demo
# ----------------------------------------------------------------------------
if __name__ == "__main__":
    key = jax.random.PRNGKey(0)
    k1, k2, k3, k4 = jax.random.split(key, 4)

    image_mean = [0.485, 0.456, 0.406]
    image_std = [0.229, 0.224, 0.225]
    # tile_rows=48 keeps even these tiny demo shapes on the multi-band
    # (pipelined, grid > 1) path so the tiled code path is exercised.
    transform = GeneralizedRCNNTransform(min_size=32, max_size=64,
                                         image_mean=image_mean,
                                         image_std=image_std,
                                         tile_rows=48)

    # Small list of variable-sized CHW images (like the PyTorch module receives).
    img1 = jax.random.uniform(k1, (3, 16, 20), dtype=jnp.float32)
    img2 = jax.random.uniform(k2, (3, 20, 14), dtype=jnp.float32)
    images = [img1, img2]

    boxes1 = jax.random.uniform(k3, (5, 4), dtype=jnp.float32) * 10.0
    boxes2 = jax.random.uniform(k4, (5, 4), dtype=jnp.float32) * 10.0
    targets = [{"boxes": boxes1, "labels": jnp.arange(5)},
               {"boxes": boxes2, "labels": jnp.arange(5)}]

    image_list, targets_out = transform(images, targets)

    jax.block_until_ready(image_list.tensors)
    jax.block_until_ready(targets_out[0]["boxes"])
    jax.block_until_ready(targets_out[1]["boxes"])

    assert image_list.tensors.shape == (2, 3, 84, 42)
    assert image_list.tensors.shape[2] % 42 == 0
    assert image_list.tensors.shape[3] % 42 == 0
    assert len(image_list.image_sizes) == 2
    assert targets_out[0]["boxes"].shape == (5, 4)
    print("KERNEL_OK")
</pallas_src>

<mosaic_0001>
module attributes {stable_mosaic.version = 11 : i64} {
  func.func @kernel(%arg0: i32, %arg1: memref<3x16x20xbf16, #tpu.memory_space<vmem>>, %arg2: memref<48x16xbf16, #tpu.memory_space<vmem>>, %arg3: memref<20x128xbf16, #tpu.memory_space<vmem>>, %arg4: memref<3x1x1xf32, #tpu.memory_space<vmem>>, %arg5: memref<3x1x128xf32, #tpu.memory_space<vmem>>, %arg6: memref<3x48x128xf32, #tpu.memory_space<vmem>>) attributes {dimension_semantics = [#tpu.dimension_semantics<parallel>], iteration_bounds = array<i64: 2>, scalar_prefetch = 0 : i64, scratch_operands = 0 : i64, tpu.core_type = #tpu.core_type<tc>, window_params = [{pipeline_mode = #tpu.pipeline_mode<synchronous>, transform_indices = @transform_0, window_bounds = array<i64: 3, 16, 20>}, {transform_indices = @transform_1, window_bounds = array<i64: 48, 16>}, {pipeline_mode = #tpu.pipeline_mode<synchronous>, transform_indices = @transform_2, window_bounds = array<i64: 20, 128>}, {pipeline_mode = #tpu.pipeline_mode<synchronous>, transform_indices = @transform_3, window_bounds = array<i64: 3, 1, 1>}, {pipeline_mode = #tpu.pipeline_mode<synchronous>, transform_indices = @transform_4, window_bounds = array<i64: 3, 1, 128>}, {transform_indices = @transform_5, window_bounds = array<i64: 3, 48, 128>}]} {
    %c0 = arith.constant 0 : index
    %c0_0 = arith.constant 0 : index
    %0 = vector.load %arg2[%c0, %c0_0] : memref<48x16xbf16, #tpu.memory_space<vmem>>, vector<48x16xbf16>
    %c0_1 = arith.constant 0 : index
    %c0_2 = arith.constant 0 : index
    %1 = vector.load %arg3[%c0_1, %c0_2] : memref<20x128xbf16, #tpu.memory_space<vmem>>, vector<20x128xbf16>
    %c48_i32 = arith.constant 48 : i32
    %2 = arith.muli %c48_i32, %arg0 : i32
    %3 = tpu.iota {dimensions = array<i32: 0>} : vector<48x1xi32>
    %4 = vector.broadcast %2 : i32 to vector<48x1xi32>
    %5 = arith.addi %4, %3 : vector<48x1xi32>
    %c32_i32 = arith.constant 32 : i32
    %6 = vector.broadcast %c32_i32 : i32 to vector<48x1xi32>
    %7 = arith.cmpi slt, %5, %6 : vector<48x1xi32>
    %8 = arith.extui %7 : vector<48x1xi1> to vector<48x1xi32>
    %9 = arith.sitofp %8 : vector<48x1xi32> to vector<48x1xf32>
    %c0_i32 = arith.constant 0 : i32
    %10 = arith.index_cast %c0_i32 : i32 to index
    %c0_3 = arith.constant 0 : index
    %c0_4 = arith.constant 0 : index
    %11 = vector.load %arg1[%10, %c0_3, %c0_4] : memref<3x16x20xbf16, #tpu.memory_space<vmem>>, vector<1x16x20xbf16>
    %12 = vector.shape_cast %11 : vector<1x16x20xbf16> to vector<16x20xbf16>
    %cst = arith.constant dense<0.000000e+00> : vector<48x20xf32>
    %13 = tpu.matmul %0, %12, %cst {dimension_numbers = #tpu.dot_dimension_numbers<[1], [0], [0], [1], [0, 0, 1, 1], [], []>} : vector<48x16xbf16>, vector<16x20xbf16>, vector<48x20xf32> -> vector<48x20xf32>
    %14 = arith.truncf %13 : vector<48x20xf32> to vector<48x20xbf16>
    %cst_5 = arith.constant dense<0.000000e+00> : vector<48x128xf32>
    %15 = tpu.matmul %14, %1, %cst_5 {dimension_numbers = #tpu.dot_dimension_numbers<[1], [0], [0], [1], [0, 0, 1, 1], [], []>} : vector<48x20xbf16>, vector<20x128xbf16>, vector<48x128xf32> -> vector<48x128xf32>
    %16 = arith.index_cast %c0_i32 : i32 to index
    %c0_6 = arith.constant 0 : index
    %c0_7 = arith.constant 0 : index
    %17 = vector.load %arg5[%16, %c0_6, %c0_7] : memref<3x1x128xf32, #tpu.memory_space<vmem>>, vector<1x1x128xf32>
    %18 = vector.shape_cast %17 : vector<1x1x128xf32> to vector<1x128xf32>
    %19 = vector.broadcast %18 : vector<1x128xf32> to vector<48x128xf32>
    %20 = vector.broadcast %9 : vector<48x1xf32> to vector<48x128xf32>
    %21 = arith.mulf %19, %20 : vector<48x128xf32>
    %22 = arith.index_cast %c0_i32 : i32 to index
    %c0_8 = arith.constant 0 : index
    %c0_9 = arith.constant 0 : index
    %23 = vector.load %arg4[%22, %c0_8, %c0_9] : memref<3x1x1xf32, #tpu.memory_space<vmem>>, vector<1x1x1xf32>
    %24 = vector.shape_cast %23 : vector<1x1x1xf32> to vector<1x1xf32>
    %25 = vector.broadcast %24 : vector<1x1xf32> to vector<48x128xf32>
    %26 = arith.mulf %15, %25 : vector<48x128xf32>
    %27 = arith.addf %26, %21 : vector<48x128xf32>
    %28 = arith.index_cast %c0_i32 : i32 to index
    %c0_10 = arith.constant 0 : index
    %c0_11 = arith.constant 0 : index
    %29 = vector.load %arg6[%28, %c0_10, %c0_11] : memref<3x48x128xf32, #tpu.memory_space<vmem>>, vector<1x48x128xf32>
    %30 = vector.shape_cast %29 : vector<1x48x128xf32> to vector<48x128xf32>
    %31 = vector.shape_cast %27 : vector<48x128xf32> to vector<1x48x128xf32>
    tpu.vector_store %arg6[%28, %c0_10, %c0_11], %31 {strides = array<i32>} : memref<3x48x128xf32, #tpu.memory_space<vmem>>, vector<1x48x128xf32>,
    %c1_i32 = arith.constant 1 : i32
    %32 = arith.index_cast %c1_i32 : i32 to index
    %c0_12 = arith.constant 0 : index
    %c0_13 = arith.constant 0 : index
    %33 = vector.load %arg1[%32, %c0_12, %c0_13] : memref<3x16x20xbf16, #tpu.memory_space<vmem>>, vector<1x16x20xbf16>
    %34 = vector.shape_cast %33 : vector<1x16x20xbf16> to vector<16x20xbf16>
    %cst_14 = arith.constant dense<0.000000e+00> : vector<48x20xf32>
    %35 = tpu.matmul %0, %34, %cst_14 {dimension_numbers = #tpu.dot_dimension_numbers<[1], [0], [0], [1], [0, 0, 1, 1], [], []>} : vector<48x16xbf16>, vector<16x20xbf16>, vector<48x20xf32> -> vector<48x20xf32>
    %36 = arith.truncf %35 : vector<48x20xf32> to vector<48x20xbf16>
    %cst_15 = arith.constant dense<0.000000e+00> : vector<48x128xf32>
    %37 = tpu.matmul %36, %1, %cst_15 {dimension_numbers = #tpu.dot_dimension_numbers<[1], [0], [0], [1], [0, 0, 1, 1], [], []>} : vector<48x20xbf16>, vector<20x128xbf16>, vector<48x128xf32> -> vector<48x128xf32>
    %38 = arith.index_cast %c1_i32 : i32 to index
    %c0_16 = arith.constant 0 : index
    %c0_17 = arith.constant 0 : index
    %39 = vector.load %arg5[%38, %c0_16, %c0_17] : memref<3x1x128xf32, #tpu.memory_space<vmem>>, vector<1x1x128xf32>
    %40 = vector.shape_cast %39 : vector<1x1x128xf32> to vector<1x128xf32>
    %41 = vector.broadcast %40 : vector<1x128xf32> to vector<48x128xf32>
    %42 = vector.broadcast %9 : vector<48x1xf32> to vector<48x128xf32>
    %43 = arith.mulf %41, %42 : vector<48x128xf32>
    %44 = arith.index_cast %c1_i32 : i32 to index
    %c0_18 = arith.constant 0 : index
    %c0_19 = arith.constant 0 : index
    %45 = vector.load %arg4[%44, %c0_18, %c0_19] : memref<3x1x1xf32, #tpu.memory_space<vmem>>, vector<1x1x1xf32>
    %46 = vector.shape_cast %45 : vector<1x1x1xf32> to vector<1x1xf32>
    %47 = vector.broadcast %46 : vector<1x1xf32> to vector<48x128xf32>
    %48 = arith.mulf %37, %47 : vector<48x128xf32>
    %49 = arith.addf %48, %43 : vector<48x128xf32>
    %50 = arith.index_cast %c1_i32 : i32 to index
    %c0_20 = arith.constant 0 : index
    %c0_21 = arith.constant 0 : index
    %51 = vector.load %arg6[%50, %c0_20, %c0_21] : memref<3x48x128xf32, #tpu.memory_space<vmem>>, vector<1x48x128xf32>
    %52 = vector.shape_cast %51 : vector<1x48x128xf32> to vector<48x128xf32>
    %53 = vector.shape_cast %49 : vector<48x128xf32> to vector<1x48x128xf32>
    tpu.vector_store %arg6[%50, %c0_20, %c0_21], %53 {strides = array<i32>} : memref<3x48x128xf32, #tpu.memory_space<vmem>>, vector<1x48x128xf32>,
    %c2_i32 = arith.constant 2 : i32
    %54 = arith.index_cast %c2_i32 : i32 to index
    %c0_22 = arith.constant 0 : index
    %c0_23 = arith.constant 0 : index
    %55 = vector.load %arg1[%54, %c0_22, %c0_23] : memref<3x16x20xbf16, #tpu.memory_space<vmem>>, vector<1x16x20xbf16>
    %56 = vector.shape_cast %55 : vector<1x16x20xbf16> to vector<16x20xbf16>
    %cst_24 = arith.constant dense<0.000000e+00> : vector<48x20xf32>
    %57 = tpu.matmul %0, %56, %cst_24 {dimension_numbers = #tpu.dot_dimension_numbers<[1], [0], [0], [1], [0, 0, 1, 1], [], []>} : vector<48x16xbf16>, vector<16x20xbf16>, vector<48x20xf32> -> vector<48x20xf32>
    %58 = arith.truncf %57 : vector<48x20xf32> to vector<48x20xbf16>
    %cst_25 = arith.constant dense<0.000000e+00> : vector<48x128xf32>
    %59 = tpu.matmul %58, %1, %cst_25 {dimension_numbers = #tpu.dot_dimension_numbers<[1], [0], [0], [1], [0, 0, 1, 1], [], []>} : vector<48x20xbf16>, vector<20x128xbf16>, vector<48x128xf32> -> vector<48x128xf32>
    %60 = arith.index_cast %c2_i32 : i32 to index
    %c0_26 = arith.constant 0 : index
    %c0_27 = arith.constant 0 : index
    %61 = vector.load %arg5[%60, %c0_26, %c0_27] : memref<3x1x128xf32, #tpu.memory_space<vmem>>, vector<1x1x128xf32>
    %62 = vector.shape_cast %61 : vector<1x1x128xf32> to vector<1x128xf32>
    %63 = vector.broadcast %62 : vector<1x128xf32> to vector<48x128xf32>
    %64 = vector.broadcast %9 : vector<48x1xf32> to vector<48x128xf32>
    %65 = arith.mulf %63, %64 : vector<48x128xf32>
    %66 = arith.index_cast %c2_i32 : i32 to index
    %c0_28 = arith.constant 0 : index
    %c0_29 = arith.constant 0 : index
    %67 = vector.load %arg4[%66, %c0_28, %c0_29] : memref<3x1x1xf32, #tpu.memory_space<vmem>>, vector<1x1x1xf32>
    %68 = vector.shape_cast %67 : vector<1x1x1xf32> to vector<1x1xf32>
    %69 = vector.broadcast %68 : vector<1x1xf32> to vector<48x128xf32>
    %70 = arith.mulf %59, %69 : vector<48x128xf32>
    %71 = arith.addf %70, %65 : vector<48x128xf32>
    %72 = arith.index_cast %c2_i32 : i32 to index
    %c0_30 = arith.constant 0 : index
    %c0_31 = arith.constant 0 : index
    %73 = vector.load %arg6[%72, %c0_30, %c0_31] : memref<3x48x128xf32, #tpu.memory_space<vmem>>, vector<1x48x128xf32>
    %74 = vector.shape_cast %73 : vector<1x48x128xf32> to vector<48x128xf32>
    %75 = vector.shape_cast %71 : vector<48x128xf32> to vector<1x48x128xf32>
    tpu.vector_store %arg6[%72, %c0_30, %c0_31], %75 {strides = array<i32>} : memref<3x48x128xf32, #tpu.memory_space<vmem>>, vector<1x48x128xf32>,
    %c3_i32 = arith.constant 3 : i32
    return
  }
  func.func @transform_0(%arg0: i32) -> (i32, i32, i32) {
    %c0_i32 = arith.constant 0 : i32
    %c0_i32_0 = arith.constant 0 : i32
    %c0_i32_1 = arith.constant 0 : i32
    %c0_i32_2 = arith.constant 0 : i32
    return %c0_i32, %c0_i32_0, %c0_i32_1 : i32, i32, i32
  }
  func.func @transform_1(%arg0: i32) -> (i32, i32) {
    %c0_i32 = arith.constant 0 : i32
    %c0_i32_0 = arith.constant 0 : i32
    return %arg0, %c0_i32 : i32, i32
  }
  func.func @transform_2(%arg0: i32) -> (i32, i32) {
    %c0_i32 = arith.constant 0 : i32
    %c0_i32_0 = arith.constant 0 : i32
    %c0_i32_1 = arith.constant 0 : i32
    return %c0_i32, %c0_i32_0 : i32, i32
  }
  func.func @transform_3(%arg0: i32) -> (i32, i32, i32) {
    %c0_i32 = arith.constant 0 : i32
    %c0_i32_0 = arith.constant 0 : i32
    %c0_i32_1 = arith.constant 0 : i32
    %c0_i32_2 = arith.constant 0 : i32
    return %c0_i32, %c0_i32_0, %c0_i32_1 : i32, i32, i32
  }
  func.func @transform_4(%arg0: i32) -> (i32, i32, i32) {
    %c0_i32 = arith.constant 0 : i32
    %c0_i32_0 = arith.constant 0 : i32
    %c0_i32_1 = arith.constant 0 : i32
    %c0_i32_2 = arith.constant 0 : i32
    return %c0_i32, %c0_i32_0, %c0_i32_1 : i32, i32, i32
  }
  func.func @transform_5(%arg0: i32) -> (i32, i32, i32) {
    %c0_i32 = arith.constant 0 : i32
    %c0_i32_0 = arith.constant 0 : i32
    %c0_i32_1 = arith.constant 0 : i32
    return %c0_i32, %arg0, %c0_i32_0 : i32, i32, i32
  }
}

module attributes {stable_mosaic.version = 11 : i64} {
  func.func @kernel(%arg0: i32, %arg1: memref<3x16x20xbf16, #tpu.memory_space<vmem>>, %arg2: memref<48x16xbf16, #tpu.memory_space<vmem>>, %arg3: memref<20x128xbf16, #tpu.memory_space<vmem>>, %arg4: memref<3x1x1xf32, #tpu.memory_space<vmem>>, %arg5: memref<3x1x128xf32, #tpu.memory_space<vmem>>, %arg6: memref<3x48x128xf32, #tpu.memory_space<vmem>>) attributes {dimension_semantics = [#tpu.dimension_semantics<parallel>], iteration_bounds = array<i64: 2>, scalar_prefetch = 0 : i64, scratch_operands = 0 : i64, tpu.core_type = #tpu.core_type<tc>, window_params = [{pipeline_mode = #tpu.pipeline_mode<synchronous>, transform_indices = @transform_0, window_bounds = array<i64: 3, 16, 20>}, {transform_indices = @transform_1, window_bounds = array<i64: 48, 16>}, {pipeline_mode = #tpu.pipeline_mode<synchronous>, transform_indices = @transform_2, window_bounds = array<i64: 20, 128>}, {pipeline_mode = #tpu.pipeline_mode<synchronous>, transform_indices = @transform_3, window_bounds = array<i64: 3, 1, 1>}, {pipeline_mode = #tpu.pipeline_mode<synchronous>, transform_indices = @transform_4, window_bounds = array<i64: 3, 1, 128>}, {transform_indices = @transform_5, window_bounds = array<i64: 3, 48, 128>}]} {
    %c0 = arith.constant 0 : index
    %c0_0 = arith.constant 0 : index
    %0 = vector.load %arg2[%c0, %c0_0] : memref<48x16xbf16, #tpu.memory_space<vmem>>, vector<48x16xbf16>
    %c0_1 = arith.constant 0 : index
    %c0_2 = arith.constant 0 : index
    %1 = vector.load %arg3[%c0_1, %c0_2] : memref<20x128xbf16, #tpu.memory_space<vmem>>, vector<20x128xbf16>
    %c48_i32 = arith.constant 48 : i32
    %2 = arith.muli %c48_i32, %arg0 : i32
    %3 = tpu.iota {dimensions = array<i32: 0>} : vector<48x1xi32>
    %4 = vector.broadcast %2 : i32 to vector<48x1xi32>
    %5 = arith.addi %4, %3 : vector<48x1xi32>
    %c32_i32 = arith.constant 32 : i32
    %6 = vector.broadcast %c32_i32 : i32 to vector<48x1xi32>
    %7 = arith.cmpi slt, %5, %6 : vector<48x1xi32>
    %8 = arith.extui %7 : vector<48x1xi1> to vector<48x1xi32>
    %9 = arith.sitofp %8 : vector<48x1xi32> to vector<48x1xf32>
    %c0_i32 = arith.constant 0 : i32
    %10 = arith.index_cast %c0_i32 : i32 to index
    %c0_3 = arith.constant 0 : index
    %c0_4 = arith.constant 0 : index
    %11 = vector.load %arg1[%10, %c0_3, %c0_4] : memref<3x16x20xbf16, #tpu.memory_space<vmem>>, vector<1x16x20xbf16>
    %12 = vector.shape_cast %11 : vector<1x16x20xbf16> to vector<16x20xbf16>
    %cst = arith.constant dense<0.000000e+00> : vector<48x20xf32>
    %13 = tpu.matmul %0, %12, %cst {dimension_numbers = #tpu.dot_dimension_numbers<[1], [0], [0], [1], [0, 0, 1, 1], [], []>} : vector<48x16xbf16>, vector<16x20xbf16>, vector<48x20xf32> -> vector<48x20xf32>
    %14 = arith.truncf %13 : vector<48x20xf32> to vector<48x20xbf16>
    %cst_5 = arith.constant dense<0.000000e+00> : vector<48x128xf32>
    %15 = tpu.matmul %14, %1, %cst_5 {dimension_numbers = #tpu.dot_dimension_numbers<[1], [0], [0], [1], [0, 0, 1, 1], [], []>} : vector<48x20xbf16>, vector<20x128xbf16>, vector<48x128xf32> -> vector<48x128xf32>
    %16 = arith.index_cast %c0_i32 : i32 to index
    %c0_6 = arith.constant 0 : index
    %c0_7 = arith.constant 0 : index
    %17 = vector.load %arg5[%16, %c0_6, %c0_7] : memref<3x1x128xf32, #tpu.memory_space<vmem>>, vector<1x1x128xf32>
    %18 = vector.shape_cast %17 : vector<1x1x128xf32> to vector<1x128xf32>
    %19 = vector.broadcast %18 : vector<1x128xf32> to vector<48x128xf32>
    %20 = vector.broadcast %9 : vector<48x1xf32> to vector<48x128xf32>
    %21 = arith.mulf %19, %20 : vector<48x128xf32>
    %22 = arith.index_cast %c0_i32 : i32 to index
    %c0_8 = arith.constant 0 : index
    %c0_9 = arith.constant 0 : index
    %23 = vector.load %arg4[%22, %c0_8, %c0_9] : memref<3x1x1xf32, #tpu.memory_space<vmem>>, vector<1x1x1xf32>
    %24 = vector.shape_cast %23 : vector<1x1x1xf32> to vector<1x1xf32>
    %25 = vector.broadcast %24 : vector<1x1xf32> to vector<48x128xf32>
    %26 = arith.mulf %15, %25 : vector<48x128xf32>
    %27 = arith.addf %26, %21 : vector<48x128xf32>
    %28 = arith.index_cast %c0_i32 : i32 to index
    %c0_10 = arith.constant 0 : index
    %c0_11 = arith.constant 0 : index
    %29 = vector.load %arg6[%28, %c0_10, %c0_11] : memref<3x48x128xf32, #tpu.memory_space<vmem>>, vector<1x48x128xf32>
    %30 = vector.shape_cast %29 : vector<1x48x128xf32> to vector<48x128xf32>
    %31 = vector.shape_cast %27 : vector<48x128xf32> to vector<1x48x128xf32>
    tpu.vector_store %arg6[%28, %c0_10, %c0_11], %31 {strides = array<i32>} : memref<3x48x128xf32, #tpu.memory_space<vmem>>, vector<1x48x128xf32>,
    %c1_i32 = arith.constant 1 : i32
    %32 = arith.index_cast %c1_i32 : i32 to index
    %c0_12 = arith.constant 0 : index
    %c0_13 = arith.constant 0 : index
    %33 = vector.load %arg1[%32, %c0_12, %c0_13] : memref<3x16x20xbf16, #tpu.memory_space<vmem>>, vector<1x16x20xbf16>
    %34 = vector.shape_cast %33 : vector<1x16x20xbf16> to vector<16x20xbf16>
    %cst_14 = arith.constant dense<0.000000e+00> : vector<48x20xf32>
    %35 = tpu.matmul %0, %34, %cst_14 {dimension_numbers = #tpu.dot_dimension_numbers<[1], [0], [0], [1], [0, 0, 1, 1], [], []>} : vector<48x16xbf16>, vector<16x20xbf16>, vector<48x20xf32> -> vector<48x20xf32>
    %36 = arith.truncf %35 : vector<48x20xf32> to vector<48x20xbf16>
    %cst_15 = arith.constant dense<0.000000e+00> : vector<48x128xf32>
    %37 = tpu.matmul %36, %1, %cst_15 {dimension_numbers = #tpu.dot_dimension_numbers<[1], [0], [0], [1], [0, 0, 1, 1], [], []>} : vector<48x20xbf16>, vector<20x128xbf16>, vector<48x128xf32> -> vector<48x128xf32>
    %38 = arith.index_cast %c1_i32 : i32 to index
    %c0_16 = arith.constant 0 : index
    %c0_17 = arith.constant 0 : index
    %39 = vector.load %arg5[%38, %c0_16, %c0_17] : memref<3x1x128xf32, #tpu.memory_space<vmem>>, vector<1x1x128xf32>
    %40 = vector.shape_cast %39 : vector<1x1x128xf32> to vector<1x128xf32>
    %41 = vector.broadcast %40 : vector<1x128xf32> to vector<48x128xf32>
    %42 = vector.broadcast %9 : vector<48x1xf32> to vector<48x128xf32>
    %43 = arith.mulf %41, %42 : vector<48x128xf32>
    %44 = arith.index_cast %c1_i32 : i32 to index
    %c0_18 = arith.constant 0 : index
    %c0_19 = arith.constant 0 : index
    %45 = vector.load %arg4[%44, %c0_18, %c0_19] : memref<3x1x1xf32, #tpu.memory_space<vmem>>, vector<1x1x1xf32>
    %46 = vector.shape_cast %45 : vector<1x1x1xf32> to vector<1x1xf32>
    %47 = vector.broadcast %46 : vector<1x1xf32> to vector<48x128xf32>
    %48 = arith.mulf %37, %47 : vector<48x128xf32>
    %49 = arith.addf %48, %43 : vector<48x128xf32>
    %50 = arith.index_cast %c1_i32 : i32 to index
    %c0_20 = arith.constant 0 : index
    %c0_21 = arith.constant 0 : index
    %51 = vector.load %arg6[%50, %c0_20, %c0_21] : memref<3x48x128xf32, #tpu.memory_space<vmem>>, vector<1x48x128xf32>
    %52 = vector.shape_cast %51 : vector<1x48x128xf32> to vector<48x128xf32>
    %53 = vector.shape_cast %49 : vector<48x128xf32> to vector<1x48x128xf32>
    tpu.vector_store %arg6[%50, %c0_20, %c0_21], %53 {strides = array<i32>} : memref<3x48x128xf32, #tpu.memory_space<vmem>>, vector<1x48x128xf32>,
    %c2_i32 = arith.constant 2 : i32
    %54 = arith.index_cast %c2_i32 : i32 to index
    %c0_22 = arith.constant 0 : index
    %c0_23 = arith.constant 0 : index
    %55 = vector.load %arg1[%54, %c0_22, %c0_23] : memref<3x16x20xbf16, #tpu.memory_space<vmem>>, vector<1x16x20xbf16>
    %56 = vector.shape_cast %55 : vector<1x16x20xbf16> to vector<16x20xbf16>
    %cst_24 = arith.constant dense<0.000000e+00> : vector<48x20xf32>
    %57 = tpu.matmul %0, %56, %cst_24 {dimension_numbers = #tpu.dot_dimension_numbers<[1], [0], [0], [1], [0, 0, 1, 1], [], []>} : vector<48x16xbf16>, vector<16x20xbf16>, vector<48x20xf32> -> vector<48x20xf32>
    %58 = arith.truncf %57 : vector<48x20xf32> to vector<48x20xbf16>
    %cst_25 = arith.constant dense<0.000000e+00> : vector<48x128xf32>
    %59 = tpu.matmul %58, %1, %cst_25 {dimension_numbers = #tpu.dot_dimension_numbers<[1], [0], [0], [1], [0, 0, 1, 1], [], []>} : vector<48x20xbf16>, vector<20x128xbf16>, vector<48x128xf32> -> vector<48x128xf32>
    %60 = arith.index_cast %c2_i32 : i32 to index
    %c0_26 = arith.constant 0 : index
    %c0_27 = arith.constant 0 : index
    %61 = vector.load %arg5[%60, %c0_26, %c0_27] : memref<3x1x128xf32, #tpu.memory_space<vmem>>, vector<1x1x128xf32>
    %62 = vector.shape_cast %61 : vector<1x1x128xf32> to vector<1x128xf32>
    %63 = vector.broadcast %62 : vector<1x128xf32> to vector<48x128xf32>
    %64 = vector.broadcast %9 : vector<48x1xf32> to vector<48x128xf32>
    %65 = arith.mulf %63, %64 : vector<48x128xf32>
    %66 = arith.index_cast %c2_i32 : i32 to index
    %c0_28 = arith.constant 0 : index
    %c0_29 = arith.constant 0 : index
    %67 = vector.load %arg4[%66, %c0_28, %c0_29] : memref<3x1x1xf32, #tpu.memory_space<vmem>>, vector<1x1x1xf32>
    %68 = vector.shape_cast %67 : vector<1x1x1xf32> to vector<1x1xf32>
    %69 = vector.broadcast %68 : vector<1x1xf32> to vector<48x128xf32>
    %70 = arith.mulf %59, %69 : vector<48x128xf32>
    %71 = arith.addf %70, %65 : vector<48x128xf32>
    %72 = arith.index_cast %c2_i32 : i32 to index
    %c0_30 = arith.constant 0 : index
    %c0_31 = arith.constant 0 : index
    %73 = vector.load %arg6[%72, %c0_30, %c0_31] : memref<3x48x128xf32, #tpu.memory_space<vmem>>, vector<1x48x128xf32>
    %74 = vector.shape_cast %73 : vector<1x48x128xf32> to vector<48x128xf32>
    %75 = vector.shape_cast %71 : vector<48x128xf32> to vector<1x48x128xf32>
    tpu.vector_store %arg6[%72, %c0_30, %c0_31], %75 {strides = array<i32>} : memref<3x48x128xf32, #tpu.memory_space<vmem>>, vector<1x48x128xf32>,
    %c3_i32 = arith.constant 3 : i32
    return
  }
  func.func @transform_0(%arg0: i32) -> (i32, i32, i32) {
    %c0_i32 = arith.constant 0 : i32
    %c0_i32_0 = arith.constant 0 : i32
    %c0_i32_1 = arith.constant 0 : i32
    %c0_i32_2 = arith.constant 0 : i32
    return %c0_i32, %c0_i32_0, %c0_i32_1 : i32, i32, i32
  }
  func.func @transform_1(%arg0: i32) -> (i32, i32) {
    %c0_i32 = arith.constant 0 : i32
    %c0_i32_0 = arith.constant 0 : i32
    return %arg0, %c0_i32 : i32, i32
  }
  func.func @transform_2(%arg0: i32) -> (i32, i32) {
    %c0_i32 = arith.constant 0 : i32
    %c0_i32_0 = arith.constant 0 : i32
    %c0_i32_1 = arith.constant 0 : i32
    return %c0_i32, %c0_i32_0 : i32, i32
  }
  func.func @transform_3(%arg0: i32) -> (i32, i32, i32) {
    %c0_i32 = arith.constant 0 : i32
    %c0_i32_0 = arith.constant 0 : i32
    %c0_i32_1 = arith.constant 0 : i32
    %c0_i32_2 = arith.constant 0 : i32
    return %c0_i32, %c0_i32_0, %c0_i32_1 : i32, i32, i32
  }
  func.func @transform_4(%arg0: i32) -> (i32, i32, i32) {
    %c0_i32 = arith.constant 0 : i32
    %c0_i32_0 = arith.constant 0 : i32
    %c0_i32_1 = arith.constant 0 : i32
    %c0_i32_2 = arith.constant 0 : i32
    return %c0_i32, %c0_i32_0, %c0_i32_1 : i32, i32, i32
  }
  func.func @transform_5(%arg0: i32) -> (i32, i32, i32) {
    %c0_i32 = arith.constant 0 : i32
    %c0_i32_0 = arith.constant 0 : i32
    %c0_i32_1 = arith.constant 0 : i32
    return %c0_i32, %arg0, %c0_i32_0 : i32, i32, i32
  }
}

</mosaic_0001>

<bundles_post_ra>
// kernel: tpu_custom_call.1
= control target key start
LH: loop header
LB: loop body
LE: loop exit
PB: predicated region body
PF: predicated region fallthrough
CT: control target
= control target key end

     0   :  { %10 = vsyncpa [#allocation3], 0  ;;  %s1184_s0 = inlined_call_operand.vmem [shape: bf16[3,16,20], index: 0, kind: input, shape index: {}]   ;;  %s1185_s1 = inlined_call_operand.vmem [shape: bf16[96,16], index: 1, kind: input, shape index: {}]   ;;  %s1186_s2 = inlined_call_operand.vmem [shape: bf16[20,128], index: 2, kind: input, shape index: {}]   ;;  %s1187_s3 = inlined_call_operand.vmem [shape: f32[3,1,1], index: 3, kind: input, shape index: {}]   ;;  %s1188_s4 = inlined_call_operand.vmem [shape: f32[3,1,128], index: 4, kind: input, shape index: {}]   ;;  %s1189_s5 = inlined_call_operand.hbm [shape: f32[3,96,128], index: 5, kind: output, shape index: {}]  }
   0x1   :  { %12 = vsyncpa [#allocation3 + $0x1], 0  ;;  %s954_s18 = smov 0   ;;  %s956_s19 = smov 0  }
   0x2   :  { %s958_s20 = smov 0   ;;  %s960_s21 = smov 0  }
   0x3 LB: > { %s975_s22 = sadd.s32 4294967295, %s913_s21   ;;  %s726_s23 = sadd.s32 4294967294, %s913_s21   ;;  %s913_s21 = sphi %s960_s21, %s1195_s21   ;;  %s909_s20 = sphi %s958_s20, %s1194_s20   ;;  %s905_s19 = sphi %s956_s19, %s1193_s19   ;;  %s901_s18 = sphi %s954_s18, %s1192_s18  }
   0x4   : > { %s979_s24 = sadd.s32 1, %s913_s21   ;;  %s135_s25 = sadd.s32 1, %s909_s20 }
   0x5   : > { %s132_s26 = ssub.s32 %s913_s21, %s979_s24  ;;  %p145_p0 = scmp.ne.s32.totalorder %s909_s20, %s905_s19 }
   0x6   : > { %p133_p1 = scmp.eq.s32.totalorder %s132_s26, 0  ;;  %p146_p2 = scmp.eq.s32.totalorder %s975_s22, 1 }
   0x7   : > { %p151_p3 = scmp.ne.s32.totalorder %s905_s19, %s901_s18  ;;  %p152_p4 = scmp.eq.s32.totalorder %s726_s23, 1 }
   0x8   : > { %s990_s27 = scalar_select %p133_p1, %s909_s20, %s135_s25  }
   0x9   : > { %p992_p5 = por %p146_p2, %p145_p0  ;;  %p996_p6 = por %p152_p4, %p151_p3 }
   0xa   : > { %p729_p7 = scmp.ge.s32.totalorder %s913_s21, 1  ;;  %p191_p8 = scmp.lt.s32.totalorder %s913_s21, 3 }
   0xc   : > { %p192_p9 = pnand %p729_p7, %p191_p8 }
   0xd   : > { %s219_s9 = smul.u32 (!%p192_p9), 6, %s975_s22  ;;  %s216_s10 = sand.u32 (!%p192_p9), 1, %s905_s19  }
   0xe   : > { %195 = sbr.rel (%p192_p9) target bundleno = 361 (0x169), region = 40  ;;  %s626_s26 = scalar_lea.sflag (!%p192_p9), [#allocation3], %s216_s10 }
   0xf   : > { %p220_p10 = scmp.lt.s32.totalorder (!%p192_p9), %s219_s9, 11  ;;  %s236_s11 = smul.u32 (!%p192_p9), 48, %s975_s22 }
  0x10   : > { %s816_s14 = smul.u32 (!%p192_p9), 144, %s216_s10 }
  0x13   : > { %v810_v0 = vld [vmem:[%s1184_s0] sm:$0xff]  ;;  %v811_v1 = vld [vmem:[%s1184_s0 + $0x8] sm:$0xff]  ;;  %v812_v2 = vld [vmem:[%s1184_s0 + $0x10] sm:$0xff]  ;;  %s1197_s9 = smov (!%p220_p10, %s219_s9), 11  ;;  %vm292_vm0 = vcmask 130048   ;;  %vm348_vm1 = vcmask 1041408   ;;  %v237_v42 = vlaneseq  ;;  %v1052_v44 = vstv %s236_s11 }
  0x14   : > { %309 = vmatpush.bf16.msra.mxu0 %v810_v0  ;;  %427 = vmatpush.bf16.msra.mxu2 %v811_v1  ;;  %s730_s12 = sshll.u32 %s1197_s9, 2  ;;  %v235_v6 = vld [vmem:[%s1186_s2 + $0x8] sm:$0x3]  ;;  %v809_v10 = vld [vmem:[%s1186_s2] sm:$0xff]  ;;  %v915_v12 = vmov 0   ;;  %vm338_vm2 = vcmask 162816  }
  0x15   : > { %815 = vmatpush.bf16.msra.mxu3 %v811_v1  ;;  %814 = vmatpush.bf16.msra.mxu1 %v810_v0  ;;  %s223_s15 = scalar_lea.vmem %s1185_s1, %s730_s12  ;;  %v334_v7 = vunpack.c.l.b16 %v235_v6  ;;  %v873_v11 = vld [vmem:[%s1187_s3] ss:$0 sm:$0xff]  ;;  %v874_v14 = vld [vmem:[%s1187_s3 + $0x1] ss:$0 sm:$0xff]  ;;  %v875_v19 = vld [vmem:[%s1187_s3 + $0x2] ss:$0 sm:$0xff] }
  0x16   : > { %v806_v3 = vld [vmem:[%s223_s15] sm:$0xff]  ;;  %v807_v4 = vld [vmem:[%s223_s15 + $0x8] sm:$0xff]  ;;  %v808_v5 = vld [vmem:[%s223_s15 + $0x10] sm:$0xff]  ;;  %871 = vset.pattern.permute.xlu0 %v915_v12  ;;  %872 = vset.pattern.permute.xlu1 %v915_v12  ;;  %v238_v43 = vshrl.u32 %v237_v42, 7  ;;  %v916_v48 = vmov 0.0   ;;  %s1069_s15 = scalar_lea.vmem [#allocation2], %s816_s14 }
  0x17   : > { %753 = vmatmul.msk.bf16.vlgmr.msra.gmra.mxu0 %vm292_vm0, %v806_v3  ;;  %769 = vmatmul.msk.bf16.vlgmr.msra.gmra.mxu2 %vm292_vm0, %v806_v3  ;;  %v336_v8 = vpack.c.b16 %v334_v7, %v334_v7  ;;  %v1058_v47 = vld [vmem:[%s1188_s4] ss:$0 sm:$0xff]  ;;  %v1076_v59 = vld [vmem:[%s1188_s4 + $0x1] ss:$0 sm:$0xff] }
  0x18   : > { %534 = vmatpush.bf16.msrb.mxu0 %v812_v2  ;;  %770 = vmatmul.msk.bf16.vlgmr.msra.gmra.mxu3 %vm292_vm0, %v807_v4  ;;  %v245_v45 = vadd.s32 %v1052_v44, %v238_v43  ;;  %v239_v46 = vadd.s32 8, %v238_v43  ;;  %v240_v55 = vadd.s32 16, %v238_v43  ;;  %v241_v63 = vadd.s32 24, %v238_v43 }
  0x19   : > { %754 = vmatmul.msk.bf16.vlgmr.msra.gmra.mxu1 %vm292_vm0, %v807_v4  ;;  %v350_v9 = vsel %vm348_vm1, %v336_v8, 0  ;;  %390 = vperm.xlu0 %871, %v873_v11   ;;  %v1093_v11 = vld [vmem:[%s1188_s4 + $0x2] ss:$0 sm:$0xff]  ;;  %v242_v12 = vadd.s32 32, %v238_v43 }
  0x1a   : > { %462 = vmatpush.bf16.msrb.mxu3 %v350_v9  ;;  %358 = vmatpush.bf16.msrb.mxu1 %v350_v9  ;;  %vm251_vm3 = vcmp.lt.s32.totalorder %v245_v45, 32  ;;  %v246_v50 = vadd.s32 %v1052_v44, %v239_v46  ;;  %v247_v58 = vadd.s32 %v1052_v44, %v240_v55  ;;  %v248_v6 = vadd.s32 %v1052_v44, %v241_v63 }
  0x1b   : > { %569 = vmatpush.bf16.msrb.mxu2 %v350_v9  ;;  %603 = vperm.xlu1 %872, %v875_v19   ;;  %v731_v49 = vsel %vm251_vm3, 1.0, %v916_v48 }
  0x1c   : > { %v380_v52 = vmul.f32 %v1058_v47, %v731_v49  ;;  %vm252_vm4 = vcmp.lt.s32.totalorder %v246_v50, 32  ;;  %vm253_vm5 = vcmp.lt.s32.totalorder %v247_v58, 32  ;;  %v485_v1 = vmul.f32 %v1076_v59, %v731_v49 }
  0x1d   : > { %v732_v57 = vsel %vm252_vm4, 1.0, %v916_v48  ;;  %vm254_vm6 = vcmp.lt.s32.totalorder %v248_v6, 32  ;;  %v592_v19 = vmul.f32 %v1093_v11, %v731_v49 }
  0x1e   : > { %359 = vmatpush.bf16.msrb.mxu1 %v809_v10  ;;  %463 = vmatpush.bf16.msrb.mxu3 %v809_v10  ;;  %v381_v60 = vmul.f32 %v1058_v47, %v732_v57 }
  0x1f   : > { %570 = vmatpush.bf16.msrb.mxu2 %v809_v10 }
  0x21   : > { %496 = vperm.xlu0 %871, %v874_v14  }
  0x27   : > { %789 = vmatmul.msk.bf16.vlgmr.msrb.gmra.mxu0 %vm292_vm0, %v806_v3 }
  0x28   : > { %771 = vmatmul.msk.bf16.gmra.mxu3 %vm292_vm0, %v808_v5 }
  0x29   : > { %755 = vmatmul.msk.bf16.gmra.mxu1 %vm292_vm0, %v808_v5 }
  0x37   : > { %790 = vmatmul.msk.bf16.gmra.mxu0 %vm292_vm0, %v807_v4  ;;  %v733_v4 = vsel %vm253_vm5, 1.0, %v916_v48 }
  0x38   : > { %v382_v8 = vmul.f32 %v1058_v47, %v733_v4  ;;  %v594_v50 = vmul.f32 %v1093_v11, %v733_v4 }
  0x47   : > { %791 = vmatmul.msk.bf16.gmra.mxu0 %vm292_vm0, %v808_v5 }
  0x8b   : > { %v1062_v51 = vpop.permute.xlu0 %390 }
  0x93   : > { %v1080_v0 = vpop.permute.xlu0 %496 }
  0x94   : > { %v311_v13 = vpop.f32.mrf.mxu0 }
  0x96   : > { %v316_v16 = vpop.f32.mrf.mxu1 }
  0x9a   : > { %v429_v15 = vpop.f32.mrf.mxu2 }
  0x9b   : > { %v434_v20 = vpop.f32.mrf.mxu3 }
  0x9c   : > { %v313_v17 = vpop.f32.mrf.mxu0 }
  0x9d   : > { %v326_v18 = vpack.c.bf16 %v313_v17, %v311_v13  ;;  %v486_v13 = vmul.f32 %v1076_v59, %v732_v57  ;;  %v734_v17 = vsel %vm254_vm6, 1.0, %v916_v48 }
  0x9e   : > { %v318_v24 = vpop.f32.mrf.mxu1  ;;  %v595_v63 = vmul.f32 %v1093_v11, %v734_v17 }
  0x9f   : > { %760 = vmatmul.msk.bf16.vlgmr.msrb.gmra.mxu1 %vm338_vm2, %v326_v18  ;;  %v327_v26 = vpack.c.bf16 %v318_v24, %v316_v16  ;;  %v1096_v16 = vpop.permute.xlu1 %603  ;;  %v383_v24 = vmul.f32 %v1058_v47, %v734_v17 }
  0xa2   : > { %v431_v21 = vpop.f32.mrf.mxu2 }
  0xa3   : > { %v444_v22 = vpack.c.bf16 %v431_v21, %v429_v15  ;;  %v436_v25 = vpop.f32.mrf.mxu3 }
  0xa4   : > { %v536_v23 = vpop.f32.mrf.mxu0  ;;  %v445_v30 = vpack.c.bf16 %v436_v25, %v434_v20  ;;  %v249_v20 = vadd.s32 %v1052_v44, %v242_v12 }
  0xa5   : > { %772 = vmatmul.msk.bf16.vlgmr.msrb.gmra.mxu3 %vm338_vm2, %v444_v22 }
  0xa6   : > { %v321_v29 = vpop.f32.mrf.mxu1  ;;  %vm255_vm7 = vcmp.lt.s32.totalorder %v249_v20, 32 }
  0xab   : > { %v439_v32 = vpop.f32.mrf.mxu3 }
  0xac   : > { %v538_v27 = vpop.f32.mrf.mxu0 }
  0xad   : > { %v551_v28 = vpack.c.bf16 %v538_v27, %v536_v23 }
  0xae   : > { %v323_v33 = vpop.f32.mrf.mxu1 }
  0xaf   : > { %792 = vmatmul.msk.bf16.vlgmr.msrb.gmra.mxu2 %vm338_vm2, %v551_v28  ;;  %761 = vmatmul.msk.bf16.gmra.mxu1 %vm338_vm2, %v327_v26  ;;  %v328_v34 = vpack.c.bf16 %v323_v33, %v321_v29  ;;  %v243_v28 = vadd.s32 40, %v238_v43  ;;  %v487_v29 = vmul.f32 %v1076_v59, %v733_v4  ;;  %v488_v43 = vmul.f32 %v1076_v59, %v734_v17 }
  0xb3   : > { %v441_v37 = vpop.f32.mrf.mxu3 }
  0xb4   : > { %v541_v31 = vpop.f32.mrf.mxu0  ;;  %v446_v38 = vpack.c.bf16 %v441_v37, %v439_v32  ;;  %v735_v32 = vsel %vm255_vm7, 1.0, %v916_v48 }
  0xb5   : > { %773 = vmatmul.msk.bf16.gmra.mxu3 %vm338_vm2, %v445_v30  ;;  %v596_v6 = vmul.f32 %v1093_v11, %v735_v32 }
  0xbc   : > { %v543_v35 = vpop.f32.mrf.mxu0 }
  0xbd   : > { %v552_v36 = vpack.c.bf16 %v543_v35, %v541_v31  ;;  %v250_v35 = vadd.s32 %v1052_v44, %v243_v28 }
  0xbf   : > { %793 = vmatmul.msk.bf16.gmra.mxu2 %vm338_vm2, %v552_v36  ;;  %762 = vmatmul.msk.bf16.gmra.mxu1 %vm338_vm2, %v328_v34  ;;  %v593_v34 = vmul.f32 %v1093_v11, %v732_v57  ;;  %vm256_vm8 = vcmp.lt.s32.totalorder %v250_v35, 32 }
  0xc0   : > { %v736_v46 = vsel %vm256_vm8, 1.0, %v916_v48  ;;  %v489_v48 = vmul.f32 %v1076_v59, %v735_v32 }
  0xc1   : > { %v385_v55 = vmul.f32 %v1058_v47, %v736_v46  ;;  %v597_v12 = vmul.f32 %v1093_v11, %v736_v46 }
  0xc4   : > { %v546_v39 = vpop.f32.mrf.mxu0 }
  0xc5   : > { %774 = vmatmul.msk.bf16.gmra.mxu3 %vm338_vm2, %v446_v38 }
  0xcc   : > { %v548_v40 = vpop.f32.mrf.mxu0 }
  0xcd   : > { %v553_v41 = vpack.c.bf16 %v548_v40, %v546_v39  ;;  %v384_v39 = vmul.f32 %v1058_v47, %v735_v32 }
  0xcf   : > { %794 = vmatmul.msk.bf16.gmra.mxu2 %vm338_vm2, %v553_v41 }
 0x11c   : > { %v361_v53 = vpop.f32.mrf.mxu1 }
 0x11d   : > { %v393_v54 = vmul.f32 %v1062_v51, %v361_v53 }
 0x11f   : > { %v399_v56 = vadd.f32 %v393_v54, %v380_v52 }
 0x121   : > { %405 = vst [vmem:[%s1069_s15] sm:$0xff] %v399_v56 }
 0x124   : > { %v363_v61 = vpop.f32.mrf.mxu1 }
 0x125   : > { %v394_v62 = vmul.f32 %v1062_v51, %v363_v61 }
 0x127   : > { %v400_v2 = vadd.f32 %v394_v62, %v381_v60 }
 0x128   : > { %v465_v3 = vpop.f32.mrf.mxu3 }
 0x129   : > { %406 = vst [vmem:[%s1069_s15 + $0x8] sm:$0xff] %v400_v2  ;;  %v499_v5 = vmul.f32 %v1080_v0, %v465_v3 }
 0x12b   : > { %v505_v7 = vadd.f32 %v499_v5, %v485_v1 }
 0x12c   : > { %v366_v9 = vpop.f32.mrf.mxu1 }
 0x12d   : > { %777 = vst [vmem:[%s1069_s15 + $0x30] sm:$0xff] %v505_v7  ;;  %v395_v10 = vmul.f32 %v1062_v51, %v366_v9 }
 0x12f   : > { %v401_v14 = vadd.f32 %v395_v10, %v382_v8 }
 0x130   : > { %v467_v15 = vpop.f32.mrf.mxu3 }
 0x131   : > { %v500_v18 = vmul.f32 %v1080_v0, %v467_v15  ;;  %407 = vst [vmem:[%s1069_s15 + $0x10] sm:$0xff] %v401_v14 }
 0x132   : > { %v572_v21 = vpop.f32.mrf.mxu2 }
 0x133   : > { %v506_v22 = vadd.f32 %v500_v18, %v486_v13  ;;  %v606_v23 = vmul.f32 %v1096_v16, %v572_v21 }
 0x134   : > { %v368_v25 = vpop.f32.mrf.mxu1 }
 0x135   : > { %778 = vst [vmem:[%s1069_s15 + $0x38] sm:$0xff] %v506_v22  ;;  %v612_v26 = vadd.f32 %v606_v23, %v592_v19  ;;  %v396_v27 = vmul.f32 %v1062_v51, %v368_v25 }
 0x137   : > { %797 = vst [vmem:[%s1069_s15 + $0x60] sm:$0xff] %v612_v26  ;;  %v402_v30 = vadd.f32 %v396_v27, %v383_v24 }
 0x138   : > { %v470_v31 = vpop.f32.mrf.mxu3 }
 0x139   : > { %v501_v33 = vmul.f32 %v1080_v0, %v470_v31  ;;  %408 = vst [vmem:[%s1069_s15 + $0x18] sm:$0xff] %v402_v30 }
 0x13a   : > { %v574_v36 = vpop.f32.mrf.mxu2 }
 0x13b   : > { %v507_v37 = vadd.f32 %v501_v33, %v487_v29  ;;  %v607_v38 = vmul.f32 %v1096_v16, %v574_v36 }
 0x13c   : > { %v371_v40 = vpop.f32.mrf.mxu1 }
 0x13d   : > { %779 = vst [vmem:[%s1069_s15 + $0x40] sm:$0xff] %v507_v37  ;;  %v613_v41 = vadd.f32 %v607_v38, %v593_v34  ;;  %v397_v42 = vmul.f32 %v1062_v51, %v371_v40 }
 0x13f   : > { %798 = vst [vmem:[%s1069_s15 + $0x68] sm:$0xff] %v613_v41  ;;  %v403_v45 = vadd.f32 %v397_v42, %v384_v39 }
 0x140   : > { %v472_v44 = vpop.f32.mrf.mxu3 }
 0x141   : > { %v502_v49 = vmul.f32 %v1080_v0, %v472_v44  ;;  %409 = vst [vmem:[%s1069_s15 + $0x20] sm:$0xff] %v403_v45 }
 0x142   : > { %v577_v52 = vpop.f32.mrf.mxu2 }
 0x143   : > { %v508_v53 = vadd.f32 %v502_v49, %v488_v43  ;;  %v608_v54 = vmul.f32 %v1096_v16, %v577_v52 }
 0x144   : > { %v373_v56 = vpop.f32.mrf.mxu1 }
 0x145   : > { %780 = vst [vmem:[%s1069_s15 + $0x48] sm:$0xff] %v508_v53  ;;  %v614_v57 = vadd.f32 %v608_v54, %v594_v50  ;;  %v398_v58 = vmul.f32 %v1062_v51, %v373_v56  ;;  %v490_v51 = vmul.f32 %v1076_v59, %v736_v46 }
 0x147   : > { %799 = vst [vmem:[%s1069_s15 + $0x70] sm:$0xff] %v614_v57  ;;  %v404_v60 = vadd.f32 %v398_v58, %v385_v55 }
 0x148   : > { %v475_v61 = vpop.f32.mrf.mxu3 }
 0x149   : > { %v503_v62 = vmul.f32 %v1080_v0, %v475_v61  ;;  %410 = vst [vmem:[%s1069_s15 + $0x28] sm:$0xff] %v404_v60 }
 0x14a   : > { %v579_v1 = vpop.f32.mrf.mxu2 }
 0x14b   : > { %v509_v47 = vadd.f32 %v503_v62, %v489_v48  ;;  %v609_v2 = vmul.f32 %v1096_v16, %v579_v1 }
 0x14d   : > { %781 = vst [vmem:[%s1069_s15 + $0x50] sm:$0xff] %v509_v47  ;;  %v615_v3 = vadd.f32 %v609_v2, %v595_v63 }
 0x14f   : > { %800 = vst [vmem:[%s1069_s15 + $0x78] sm:$0xff] %v615_v3 }
 0x150   : > { %v477_v4 = vpop.f32.mrf.mxu3 }
 0x151   : > { %v504_v5 = vmul.f32 %v1080_v0, %v477_v4 }
 0x152   : > { %v582_v7 = vpop.f32.mrf.mxu2 }
 0x153   : > { %v510_v8 = vadd.f32 %v504_v5, %v490_v51  ;;  %v610_v9 = vmul.f32 %v1096_v16, %v582_v7 }
 0x155   : > { %782 = vst [vmem:[%s1069_s15 + $0x58] sm:$0xff] %v510_v8  ;;  %v616_v10 = vadd.f32 %v610_v9, %v596_v6 }
 0x157   : > { %801 = vst [vmem:[%s1069_s15 + $0x80] sm:$0xff] %v616_v10 }
 0x15a   : > { %v584_v13 = vpop.f32.mrf.mxu2 }
 0x15b   : > { %v611_v14 = vmul.f32 %v1096_v16, %v584_v13 }
 0x15d   : > { %v617_v15 = vadd.f32 %v611_v14, %v597_v12 }
 0x15f   : > { %802 = vst [vmem:[%s1069_s15 + $0x88] sm:$0xff] %v617_v15 }
 0x160   : > { %s637_s7 = scalar_lea.hbm %s1189_s5, %s236_s11  ;;  %s648_s8 = sshll.u32 %s1069_s15, 4  ;;  %s649_s8 = int_to_ptr.vmem [resolvable:$true] %s648_s8 }
 0x161   : > { %s650_s9 = sshll.u32 %s637_s7, 4  ;;  %s917_s12 = smov 768   ;;  %s651_s9 = int_to_ptr.hbm [resolvable:$true] %s650_s9 }
 0x162   : > { %817 = sst [smem:[#allocation5]] (%p992_p5), %s917_s12  ;;  %s918_s22 = smov 1536  }
 0x163   : > { %818 = sst [smem:[#allocation5 + $0x1]] (%p992_p5), %s918_s22  ;;  %s919_s10 = smov 6  }
 0x164   : > { %819 = sst [smem:[#allocation5 + $0x2]] (%p992_p5), %s919_s10  ;;  %s920_s13 = smov 128  }
 0x165   : > { %820 = sst [smem:[#allocation5 + $0x3]] (%p992_p5), %s920_s13  ;;  %s921_s11 = smov 8  }
 0x166   : > { %821 = sst [smem:[#allocation5 + $0x4]] (%p992_p5), %s920_s13  ;;  %s922_s14 = smov [#allocation4]  }
 0x167   : > { %822 = sst [smem:[#allocation5 + $0x5]] (%p992_p5), %s921_s11  ;;  %s923_s15 = smov 0  }
 0x168   : > { %823 = dma.general (%p992_p5), %s649_s8, 2304, %s651_s9, %s626_s26, %s922_s14, [#allocation5], %s923_s15, 0  }
 0x169 PF: > { %p829_p11 = scmp.ge.s32.totalorder %s913_s21, 2  ;;  %s678_s16 = sand.u32 1, %s901_s18  }
 0x16a   : > { %s679_s17 = scalar_lea.sflag [#allocation3], %s678_s16 }
 0x16b   : > { %p826_p12 = pnand %p829_p11, %p996_p6 }
 0x16d   : > { %p827_p13 = pneg %p826_p12 }
 0x16f   : > { %896 = dma.done.wait (%p827_p13), %s679_s17, 2304  }
 0x170   : > { %898 = vsyncadd (%p827_p13), %s679_s17, 4294964992  ;;  %p15_p0 = scmp.ge.s32.totalorder %s979_s24, 4   ;;  %s1192_s18 = smov %s905_s19 }
 0x171   : > { %s1193_s19 = smov %s909_s20  ;;  %s1194_s20 = smov %s990_s27 }
 0x172   : > { %s1195_s21 = smov %s979_s24  ;;  %17 = sbr.rel (!%p15_p0) target bundleno = 3 (0x3), region = 88 }
 0x177   :  { %685 = vsyncpa [#allocation3], 1 }
 0x178   :  { %687 = vsyncpa [#allocation3 + $0x1], 1 }

// kernel: tpu_custom_call.1
= control target key start
LH: loop header
LB: loop body
LE: loop exit
PB: predicated region body
PF: predicated region fallthrough
CT: control target
= control target key end

     0   :  { %10 = vsyncpa [#allocation3], 0  ;;  %s1184_s0 = inlined_call_operand.vmem [shape: bf16[3,16,20], index: 0, kind: input, shape index: {}]   ;;  %s1185_s1 = inlined_call_operand.vmem [shape: bf16[96,16], index: 1, kind: input, shape index: {}]   ;;  %s1186_s2 = inlined_call_operand.vmem [shape: bf16[20,128], index: 2, kind: input, shape index: {}]   ;;  %s1187_s3 = inlined_call_operand.vmem [shape: f32[3,1,1], index: 3, kind: input, shape index: {}]   ;;  %s1188_s4 = inlined_call_operand.vmem [shape: f32[3,1,128], index: 4, kind: input, shape index: {}]   ;;  %s1189_s5 = inlined_call_operand.hbm [shape: f32[3,96,128], index: 5, kind: output, shape index: {}]  }
   0x1   :  { %12 = vsyncpa [#allocation3 + $0x1], 0  ;;  %s954_s18 = smov 0   ;;  %s956_s19 = smov 0  }
   0x2   :  { %s958_s20 = smov 0   ;;  %s960_s21 = smov 0  }
   0x3 LB: > { %s975_s22 = sadd.s32 4294967295, %s913_s21   ;;  %s726_s23 = sadd.s32 4294967294, %s913_s21   ;;  %s913_s21 = sphi %s960_s21, %s1195_s21   ;;  %s909_s20 = sphi %s958_s20, %s1194_s20   ;;  %s905_s19 = sphi %s956_s19, %s1193_s19   ;;  %s901_s18 = sphi %s954_s18, %s1192_s18  }
   0x4   : > { %s979_s24 = sadd.s32 1, %s913_s21   ;;  %s135_s25 = sadd.s32 1, %s909_s20 }
   0x5   : > { %s132_s26 = ssub.s32 %s913_s21, %s979_s24  ;;  %p145_p0 = scmp.ne.s32.totalorder %s909_s20, %s905_s19 }
   0x6   : > { %p133_p1 = scmp.eq.s32.totalorder %s132_s26, 0  ;;  %p146_p2 = scmp.eq.s32.totalorder %s975_s22, 1 }
   0x7   : > { %p151_p3 = scmp.ne.s32.totalorder %s905_s19, %s901_s18  ;;  %p152_p4 = scmp.eq.s32.totalorder %s726_s23, 1 }
   0x8   : > { %s990_s27 = scalar_select %p133_p1, %s909_s20, %s135_s25  }
   0x9   : > { %p992_p5 = por %p146_p2, %p145_p0  ;;  %p996_p6 = por %p152_p4, %p151_p3 }
   0xa   : > { %p729_p7 = scmp.ge.s32.totalorder %s913_s21, 1  ;;  %p191_p8 = scmp.lt.s32.totalorder %s913_s21, 3 }
   0xc   : > { %p192_p9 = pnand %p729_p7, %p191_p8 }
   0xd   : > { %s219_s9 = smul.u32 (!%p192_p9), 6, %s975_s22  ;;  %s216_s10 = sand.u32 (!%p192_p9), 1, %s905_s19  }
   0xe   : > { %195 = sbr.rel (%p192_p9) target bundleno = 361 (0x169), region = 40  ;;  %s626_s26 = scalar_lea.sflag (!%p192_p9), [#allocation3], %s216_s10 }
   0xf   : > { %p220_p10 = scmp.lt.s32.totalorder (!%p192_p9), %s219_s9, 11  ;;  %s236_s11 = smul.u32 (!%p192_p9), 48, %s975_s22 }
  0x10   : > { %s816_s14 = smul.u32 (!%p192_p9), 144, %s216_s10 }
  0x13   : > { %v810_v0 = vld [vmem:[%s1184_s0] sm:$0xff]  ;;  %v811_v1 = vld [vmem:[%s1184_s0 + $0x8] sm:$0xff]  ;;  %v812_v2 = vld [vmem:[%s1184_s0 + $0x10] sm:$0xff]  ;;  %s1197_s9 = smov (!%p220_p10, %s219_s9), 11  ;;  %vm292_vm0 = vcmask 130048   ;;  %vm348_vm1 = vcmask 1041408   ;;  %v237_v42 = vlaneseq  ;;  %v1052_v44 = vstv %s236_s11 }
  0x14   : > { %309 = vmatpush.bf16.msra.mxu0 %v810_v0  ;;  %427 = vmatpush.bf16.msra.mxu2 %v811_v1  ;;  %s730_s12 = sshll.u32 %s1197_s9, 2  ;;  %v235_v6 = vld [vmem:[%s1186_s2 + $0x8] sm:$0x3]  ;;  %v809_v10 = vld [vmem:[%s1186_s2] sm:$0xff]  ;;  %v915_v12 = vmov 0   ;;  %vm338_vm2 = vcmask 162816  }
  0x15   : > { %815 = vmatpush.bf16.msra.mxu3 %v811_v1  ;;  %814 = vmatpush.bf16.msra.mxu1 %v810_v0  ;;  %s223_s15 = scalar_lea.vmem %s1185_s1, %s730_s12  ;;  %v334_v7 = vunpack.c.l.b16 %v235_v6  ;;  %v873_v11 = vld [vmem:[%s1187_s3] ss:$0 sm:$0xff]  ;;  %v874_v14 = vld [vmem:[%s1187_s3 + $0x1] ss:$0 sm:$0xff]  ;;  %v875_v19 = vld [vmem:[%s1187_s3 + $0x2] ss:$0 sm:$0xff] }
  0x16   : > { %v806_v3 = vld [vmem:[%s223_s15] sm:$0xff]  ;;  %v807_v4 = vld [vmem:[%s223_s15 + $0x8] sm:$0xff]  ;;  %v808_v5 = vld [vmem:[%s223_s15 + $0x10] sm:$0xff]  ;;  %871 = vset.pattern.permute.xlu0 %v915_v12  ;;  %872 = vset.pattern.permute.xlu1 %v915_v12  ;;  %v238_v43 = vshrl.u32 %v237_v42, 7  ;;  %v916_v48 = vmov 0.0   ;;  %s1069_s15 = scalar_lea.vmem [#allocation2], %s816_s14 }
  0x17   : > { %753 = vmatmul.msk.bf16.vlgmr.msra.gmra.mxu0 %vm292_vm0, %v806_v3  ;;  %769 = vmatmul.msk.bf16.vlgmr.msra.gmra.mxu2 %vm292_vm0, %v806_v3  ;;  %v336_v8 = vpack.c.b16 %v334_v7, %v334_v7  ;;  %v1058_v47 = vld [vmem:[%s1188_s4] ss:$0 sm:$0xff]  ;;  %v1076_v59 = vld [vmem:[%s1188_s4 + $0x1] ss:$0 sm:$0xff] }
  0x18   : > { %534 = vmatpush.bf16.msrb.mxu0 %v812_v2  ;;  %770 = vmatmul.msk.bf16.vlgmr.msra.gmra.mxu3 %vm292_vm0, %v807_v4  ;;  %v245_v45 = vadd.s32 %v1052_v44, %v238_v43  ;;  %v239_v46 = vadd.s32 8, %v238_v43  ;;  %v240_v55 = vadd.s32 16, %v238_v43  ;;  %v241_v63 = vadd.s32 24, %v238_v43 }
  0x19   : > { %754 = vmatmul.msk.bf16.vlgmr.msra.gmra.mxu1 %vm292_vm0, %v807_v4  ;;  %v350_v9 = vsel %vm348_vm1, %v336_v8, 0  ;;  %390 = vperm.xlu0 %871, %v873_v11   ;;  %v1093_v11 = vld [vmem:[%s1188_s4 + $0x2] ss:$0 sm:$0xff]  ;;  %v242_v12 = vadd.s32 32, %v238_v43 }
  0x1a   : > { %462 = vmatpush.bf16.msrb.mxu3 %v350_v9  ;;  %358 = vmatpush.bf16.msrb.mxu1 %v350_v9  ;;  %vm251_vm3 = vcmp.lt.s32.totalorder %v245_v45, 32  ;;  %v246_v50 = vadd.s32 %v1052_v44, %v239_v46  ;;  %v247_v58 = vadd.s32 %v1052_v44, %v240_v55  ;;  %v248_v6 = vadd.s32 %v1052_v44, %v241_v63 }
  0x1b   : > { %569 = vmatpush.bf16.msrb.mxu2 %v350_v9  ;;  %603 = vperm.xlu1 %872, %v875_v19   ;;  %v731_v49 = vsel %vm251_vm3, 1.0, %v916_v48 }
  0x1c   : > { %v380_v52 = vmul.f32 %v1058_v47, %v731_v49  ;;  %vm252_vm4 = vcmp.lt.s32.totalorder %v246_v50, 32  ;;  %vm253_vm5 = vcmp.lt.s32.totalorder %v247_v58, 32  ;;  %v485_v1 = vmul.f32 %v1076_v59, %v731_v49 }
  0x1d   : > { %v732_v57 = vsel %vm252_vm4, 1.0, %v916_v48  ;;  %vm254_vm6 = vcmp.lt.s32.totalorder %v248_v6, 32  ;;  %v592_v19 = vmul.f32 %v1093_v11, %v731_v49 }
  0x1e   : > { %359 = vmatpush.bf16.msrb.mxu1 %v809_v10  ;;  %463 = vmatpush.bf16.msrb.mxu3 %v809_v10  ;;  %v381_v60 = vmul.f32 %v1058_v47, %v732_v57 }
  0x1f   : > { %570 = vmatpush.bf16.msrb.mxu2 %v809_v10 }
  0x21   : > { %496 = vperm.xlu0 %871, %v874_v14  }
  0x27   : > { %789 = vmatmul.msk.bf16.vlgmr.msrb.gmra.mxu0 %vm292_vm0, %v806_v3 }
  0x28   : > { %771 = vmatmul.msk.bf16.gmra.mxu3 %vm292_vm0, %v808_v5 }
  0x29   : > { %755 = vmatmul.msk.bf16.gmra.mxu1 %vm292_vm0, %v808_v5 }
  0x37   : > { %790 = vmatmul.msk.bf16.gmra.mxu0 %vm292_vm0, %v807_v4  ;;  %v733_v4 = vsel %vm253_vm5, 1.0, %v916_v48 }
  0x38   : > { %v382_v8 = vmul.f32 %v1058_v47, %v733_v4  ;;  %v594_v50 = vmul.f32 %v1093_v11, %v733_v4 }
  0x47   : > { %791 = vmatmul.msk.bf16.gmra.mxu0 %vm292_vm0, %v808_v5 }
  0x8b   : > { %v1062_v51 = vpop.permute.xlu0 %390 }
  0x93   : > { %v1080_v0 = vpop.permute.xlu0 %496 }
  0x94   : > { %v311_v13 = vpop.f32.mrf.mxu0 }
  0x96   : > { %v316_v16 = vpop.f32.mrf.mxu1 }
  0x9a   : > { %v429_v15 = vpop.f32.mrf.mxu2 }
  0x9b   : > { %v434_v20 = vpop.f32.mrf.mxu3 }
  0x9c   : > { %v313_v17 = vpop.f32.mrf.mxu0 }
  0x9d   : > { %v326_v18 = vpack.c.bf16 %v313_v17, %v311_v13  ;;  %v486_v13 = vmul.f32 %v1076_v59, %v732_v57  ;;  %v734_v17 = vsel %vm254_vm6, 1.0, %v916_v48 }
  0x9e   : > { %v318_v24 = vpop.f32.mrf.mxu1  ;;  %v595_v63 = vmul.f32 %v1093_v11, %v734_v17 }
  0x9f   : > { %760 = vmatmul.msk.bf16.vlgmr.msrb.gmra.mxu1 %vm338_vm2, %v326_v18  ;;  %v327_v26 = vpack.c.bf16 %v318_v24, %v316_v16  ;;  %v1096_v16 = vpop.permute.xlu1 %603  ;;  %v383_v24 = vmul.f32 %v1058_v47, %v734_v17 }
  0xa2   : > { %v431_v21 = vpop.f32.mrf.mxu2 }
  0xa3   : > { %v444_v22 = vpack.c.bf16 %v431_v21, %v429_v15  ;;  %v436_v25 = vpop.f32.mrf.mxu3 }
  0xa4   : > { %v536_v23 = vpop.f32.mrf.mxu0  ;;  %v445_v30 = vpack.c.bf16 %v436_v25, %v434_v20  ;;  %v249_v20 = vadd.s32 %v1052_v44, %v242_v12 }
  0xa5   : > { %772 = vmatmul.msk.bf16.vlgmr.msrb.gmra.mxu3 %vm338_vm2, %v444_v22 }
  0xa6   : > { %v321_v29 = vpop.f32.mrf.mxu1  ;;  %vm255_vm7 = vcmp.lt.s32.totalorder %v249_v20, 32 }
  0xab   : > { %v439_v32 = vpop.f32.mrf.mxu3 }
  0xac   : > { %v538_v27 = vpop.f32.mrf.mxu0 }
  0xad   : > { %v551_v28 = vpack.c.bf16 %v538_v27, %v536_v23 }
  0xae   : > { %v323_v33 = vpop.f32.mrf.mxu1 }
  0xaf   : > { %792 = vmatmul.msk.bf16.vlgmr.msrb.gmra.mxu2 %vm338_vm2, %v551_v28  ;;  %761 = vmatmul.msk.bf16.gmra.mxu1 %vm338_vm2, %v327_v26  ;;  %v328_v34 = vpack.c.bf16 %v323_v33, %v321_v29  ;;  %v243_v28 = vadd.s32 40, %v238_v43  ;;  %v487_v29 = vmul.f32 %v1076_v59, %v733_v4  ;;  %v488_v43 = vmul.f32 %v1076_v59, %v734_v17 }
  0xb3   : > { %v441_v37 = vpop.f32.mrf.mxu3 }
  0xb4   : > { %v541_v31 = vpop.f32.mrf.mxu0  ;;  %v446_v38 = vpack.c.bf16 %v441_v37, %v439_v32  ;;  %v735_v32 = vsel %vm255_vm7, 1.0, %v916_v48 }
  0xb5   : > { %773 = vmatmul.msk.bf16.gmra.mxu3 %vm338_vm2, %v445_v30  ;;  %v596_v6 = vmul.f32 %v1093_v11, %v735_v32 }
  0xbc   : > { %v543_v35 = vpop.f32.mrf.mxu0 }
  0xbd   : > { %v552_v36 = vpack.c.bf16 %v543_v35, %v541_v31  ;;  %v250_v35 = vadd.s32 %v1052_v44, %v243_v28 }
  0xbf   : > { %793 = vmatmul.msk.bf16.gmra.mxu2 %vm338_vm2, %v552_v36  ;;  %762 = vmatmul.msk.bf16.gmra.mxu1 %vm338_vm2, %v328_v34  ;;  %v593_v34 = vmul.f32 %v1093_v11, %v732_v57  ;;  %vm256_vm8 = vcmp.lt.s32.totalorder %v250_v35, 32 }
  0xc0   : > { %v736_v46 = vsel %vm256_vm8, 1.0, %v916_v48  ;;  %v489_v48 = vmul.f32 %v1076_v59, %v735_v32 }
  0xc1   : > { %v385_v55 = vmul.f32 %v1058_v47, %v736_v46  ;;  %v597_v12 = vmul.f32 %v1093_v11, %v736_v46 }
  0xc4   : > { %v546_v39 = vpop.f32.mrf.mxu0 }
  0xc5   : > { %774 = vmatmul.msk.bf16.gmra.mxu3 %vm338_vm2, %v446_v38 }
  0xcc   : > { %v548_v40 = vpop.f32.mrf.mxu0 }
  0xcd   : > { %v553_v41 = vpack.c.bf16 %v548_v40, %v546_v39  ;;  %v384_v39 = vmul.f32 %v1058_v47, %v735_v32 }
  0xcf   : > { %794 = vmatmul.msk.bf16.gmra.mxu2 %vm338_vm2, %v553_v41 }
 0x11c   : > { %v361_v53 = vpop.f32.mrf.mxu1 }
 0x11d   : > { %v393_v54 = vmul.f32 %v1062_v51, %v361_v53 }
 0x11f   : > { %v399_v56 = vadd.f32 %v393_v54, %v380_v52 }
 0x121   : > { %405 = vst [vmem:[%s1069_s15] sm:$0xff] %v399_v56 }
 0x124   : > { %v363_v61 = vpop.f32.mrf.mxu1 }
 0x125   : > { %v394_v62 = vmul.f32 %v1062_v51, %v363_v61 }
 0x127   : > { %v400_v2 = vadd.f32 %v394_v62, %v381_v60 }
 0x128   : > { %v465_v3 = vpop.f32.mrf.mxu3 }
 0x129   : > { %406 = vst [vmem:[%s1069_s15 + $0x8] sm:$0xff] %v400_v2  ;;  %v499_v5 = vmul.f32 %v1080_v0, %v465_v3 }
 0x12b   : > { %v505_v7 = vadd.f32 %v499_v5, %v485_v1 }
 0x12c   : > { %v366_v9 = vpop.f32.mrf.mxu1 }
 0x12d   : > { %777 = vst [vmem:[%s1069_s15 + $0x30] sm:$0xff] %v505_v7  ;;  %v395_v10 = vmul.f32 %v1062_v51, %v366_v9 }
 0x12f   : > { %v401_v14 = vadd.f32 %v395_v10, %v382_v8 }
 0x130   : > { %v467_v15 = vpop.f32.mrf.mxu3 }
 0x131   : > { %v500_v18 = vmul.f32 %v1080_v0, %v467_v15  ;;  %407 = vst [vmem:[%s1069_s15 + $0x10] sm:$0xff] %v401_v14 }
 0x132   : > { %v572_v21 = vpop.f32.mrf.mxu2 }
 0x133   : > { %v506_v22 = vadd.f32 %v500_v18, %v486_v13  ;;  %v606_v23 = vmul.f32 %v1096_v16, %v572_v21 }
 0x134   : > { %v368_v25 = vpop.f32.mrf.mxu1 }
 0x135   : > { %778 = vst [vmem:[%s1069_s15 + $0x38] sm:$0xff] %v506_v22  ;;  %v612_v26 = vadd.f32 %v606_v23, %v592_v19  ;;  %v396_v27 = vmul.f32 %v1062_v51, %v368_v25 }
 0x137   : > { %797 = vst [vmem:[%s1069_s15 + $0x60] sm:$0xff] %v612_v26  ;;  %v402_v30 = vadd.f32 %v396_v27, %v383_v24 }
 0x138   : > { %v470_v31 = vpop.f32.mrf.mxu3 }
 0x139   : > { %v501_v33 = vmul.f32 %v1080_v0, %v470_v31  ;;  %408 = vst [vmem:[%s1069_s15 + $0x18] sm:$0xff] %v402_v30 }
 0x13a   : > { %v574_v36 = vpop.f32.mrf.mxu2 }
 0x13b   : > { %v507_v37 = vadd.f32 %v501_v33, %v487_v29  ;;  %v607_v38 = vmul.f32 %v1096_v16, %v574_v36 }
 0x13c   : > { %v371_v40 = vpop.f32.mrf.mxu1 }
 0x13d   : > { %779 = vst [vmem:[%s1069_s15 + $0x40] sm:$0xff] %v507_v37  ;;  %v613_v41 = vadd.f32 %v607_v38, %v593_v34  ;;  %v397_v42 = vmul.f32 %v1062_v51, %v371_v40 }
 0x13f   : > { %798 = vst [vmem:[%s1069_s15 + $0x68] sm:$0xff] %v613_v41  ;;  %v403_v45 = vadd.f32 %v397_v42, %v384_v39 }
 0x140   : > { %v472_v44 = vpop.f32.mrf.mxu3 }
 0x141   : > { %v502_v49 = vmul.f32 %v1080_v0, %v472_v44  ;;  %409 = vst [vmem:[%s1069_s15 + $0x20] sm:$0xff] %v403_v45 }
 0x142   : > { %v577_v52 = vpop.f32.mrf.mxu2 }
 0x143   : > { %v508_v53 = vadd.f32 %v502_v49, %v488_v43  ;;  %v608_v54 = vmul.f32 %v1096_v16, %v577_v52 }
 0x144   : > { %v373_v56 = vpop.f32.mrf.mxu1 }
 0x145   : > { %780 = vst [vmem:[%s1069_s15 + $0x48] sm:$0xff] %v508_v53  ;;  %v614_v57 = vadd.f32 %v608_v54, %v594_v50  ;;  %v398_v58 = vmul.f32 %v1062_v51, %v373_v56  ;;  %v490_v51 = vmul.f32 %v1076_v59, %v736_v46 }
 0x147   : > { %799 = vst [vmem:[%s1069_s15 + $0x70] sm:$0xff] %v614_v57  ;;  %v404_v60 = vadd.f32 %v398_v58, %v385_v55 }
 0x148   : > { %v475_v61 = vpop.f32.mrf.mxu3 }
 0x149   : > { %v503_v62 = vmul.f32 %v1080_v0, %v475_v61  ;;  %410 = vst [vmem:[%s1069_s15 + $0x28] sm:$0xff] %v404_v60 }
 0x14a   : > { %v579_v1 = vpop.f32.mrf.mxu2 }
 0x14b   : > { %v509_v47 = vadd.f32 %v503_v62, %v489_v48  ;;  %v609_v2 = vmul.f32 %v1096_v16, %v579_v1 }
 0x14d   : > { %781 = vst [vmem:[%s1069_s15 + $0x50] sm:$0xff] %v509_v47  ;;  %v615_v3 = vadd.f32 %v609_v2, %v595_v63 }
 0x14f   : > { %800 = vst [vmem:[%s1069_s15 + $0x78] sm:$0xff] %v615_v3 }
 0x150   : > { %v477_v4 = vpop.f32.mrf.mxu3 }
 0x151   : > { %v504_v5 = vmul.f32 %v1080_v0, %v477_v4 }
 0x152   : > { %v582_v7 = vpop.f32.mrf.mxu2 }
 0x153   : > { %v510_v8 = vadd.f32 %v504_v5, %v490_v51  ;;  %v610_v9 = vmul.f32 %v1096_v16, %v582_v7 }
 0x155   : > { %782 = vst [vmem:[%s1069_s15 + $0x58] sm:$0xff] %v510_v8  ;;  %v616_v10 = vadd.f32 %v610_v9, %v596_v6 }
 0x157   : > { %801 = vst [vmem:[%s1069_s15 + $0x80] sm:$0xff] %v616_v10 }
 0x15a   : > { %v584_v13 = vpop.f32.mrf.mxu2 }
 0x15b   : > { %v611_v14 = vmul.f32 %v1096_v16, %v584_v13 }
 0x15d   : > { %v617_v15 = vadd.f32 %v611_v14, %v597_v12 }
 0x15f   : > { %802 = vst [vmem:[%s1069_s15 + $0x88] sm:$0xff] %v617_v15 }
 0x160   : > { %s637_s7 = scalar_lea.hbm %s1189_s5, %s236_s11  ;;  %s648_s8 = sshll.u32 %s1069_s15, 4  ;;  %s649_s8 = int_to_ptr.vmem [resolvable:$true] %s648_s8 }
 0x161   : > { %s650_s9 = sshll.u32 %s637_s7, 4  ;;  %s917_s12 = smov 768   ;;  %s651_s9 = int_to_ptr.hbm [resolvable:$true] %s650_s9 }
 0x162   : > { %817 = sst [smem:[#allocation5]] (%p992_p5), %s917_s12  ;;  %s918_s22 = smov 1536  }
 0x163   : > { %818 = sst [smem:[#allocation5 + $0x1]] (%p992_p5), %s918_s22  ;;  %s919_s10 = smov 6  }
 0x164   : > { %819 = sst [smem:[#allocation5 + $0x2]] (%p992_p5), %s919_s10  ;;  %s920_s13 = smov 128  }
 0x165   : > { %820 = sst [smem:[#allocation5 + $0x3]] (%p992_p5), %s920_s13  ;;  %s921_s11 = smov 8  }
 0x166   : > { %821 = sst [smem:[#allocation5 + $0x4]] (%p992_p5), %s920_s13  ;;  %s922_s14 = smov [#allocation4]  }
 0x167   : > { %822 = sst [smem:[#allocation5 + $0x5]] (%p992_p5), %s921_s11  ;;  %s923_s15 = smov 0  }
 0x168   : > { %823 = dma.general (%p992_p5), %s649_s8, 2304, %s651_s9, %s626_s26, %s922_s14, [#allocation5], %s923_s15, 0  }
 0x169 PF: > { %p829_p11 = scmp.ge.s32.totalorder %s913_s21, 2  ;;  %s678_s16 = sand.u32 1, %s901_s18  }
 0x16a   : > { %s679_s17 = scalar_lea.sflag [#allocation3], %s678_s16 }
 0x16b   : > { %p826_p12 = pnand %p829_p11, %p996_p6 }
 0x16d   : > { %p827_p13 = pneg %p826_p12 }
 0x16f   : > { %896 = dma.done.wait (%p827_p13), %s679_s17, 2304  }
 0x170   : > { %898 = vsyncadd (%p827_p13), %s679_s17, 4294964992  ;;  %p15_p0 = scmp.ge.s32.totalorder %s979_s24, 4   ;;  %s1192_s18 = smov %s905_s19 }
 0x171   : > { %s1193_s19 = smov %s909_s20  ;;  %s1194_s20 = smov %s990_s27 }
 0x172   : > { %s1195_s21 = smov %s979_s24  ;;  %17 = sbr.rel (!%p15_p0) target bundleno = 3 (0x3), region = 88 }
 0x177   :  { %685 = vsyncpa [#allocation3], 1 }
 0x178   :  { %687 = vsyncpa [#allocation3 + $0x1], 1 }

</bundles_post_ra>
